<compile_context>
chip_gen: v5e
topology: v5e:2x2
jax: 0.10.0
libtpu: 0.0.40
codegen_flags: <defaults>
</compile_context>

<pallas_src>
import functools

import jax
import jax.numpy as jnp
from jax.experimental import pallas as pl
from jax.experimental.pallas import tpu as pltpu


def _channel_attention_kernel(x_ref, w1t_ref, w2t_ref, o_ref,
                              sum_acc, max_acc, *, hw_total, t_hw, ragged):
    """Grid: (batch tiles, HW tiles); axis 1 (HW) is the reduction axis.

    x_ref:   (tn, C, t_hw)  NCHW tile: channels on sublanes, spatial on lanes
    w1t_ref: (C, Cr)        1x1 conv #1 weight, transposed
    w2t_ref: (Cr, C)        1x1 conv #2 weight, transposed
    o_ref:   (tn, C)        sigmoid(MLP(avg) + MLP(max))
    sum_acc: (tn, C) f32    running spatial sum
    max_acc: (tn, C) x.dtype running spatial max (requires float dtype)
    """
    hw_idx = pl.program_id(1)
    last = pl.num_programs(1) - 1

    @pl.when(hw_idx == 0)
    def _init():
        sum_acc[...] = jnp.zeros_like(sum_acc)
        max_acc[...] = jnp.full_like(max_acc, -jnp.inf)

    def _accumulate(x, valid=None):
        xf = x.astype(jnp.float32)
        if valid is not None:
            xf = jnp.where(valid, xf, 0.0)
            x = jnp.where(valid, x, -jnp.inf)
        sum_acc[...] += jnp.sum(xf, axis=-1)
        max_acc[...] = jnp.maximum(max_acc[...], jnp.max(x, axis=-1))

    if ragged:
        # Steady state: full tiles, zero masking work.
        @pl.when(hw_idx != last)
        def _full_tile():
            _accumulate(x_ref[...])

        # Last tile only: mask stale VMEM beyond the valid H*W columns out of
        # both the sum and the max.
        @pl.when(hw_idx == last)
        def _partial_tile():
            x = x_ref[...]
            col = jax.lax.broadcasted_iota(jnp.int32, x.shape, dimension=2)
            _accumulate(x, valid=(hw_idx * t_hw + col) < hw_total)
    else:
        _accumulate(x_ref[...])

    @pl.when(hw_idx == last)
    def _finalize():
        avg = sum_acc[...] / jnp.float32(hw_total)        # (tn, C)
        mx = max_acc[...].astype(jnp.float32)             # (tn, C)
        w1t = w1t_ref[...].astype(jnp.float32)            # (C, Cr)
        w2t = w2t_ref[...].astype(jnp.float32)            # (Cr, C)
        # Shared MLP.  The second layer is linear & bias-free, so:
        #   ReLU(a W1) W2 + ReLU(m W1) W2 = (ReLU(a W1) + ReLU(m W1)) W2.
        h = (jnp.maximum(jnp.dot(avg, w1t, preferred_element_type=jnp.float32), 0.0)
             + jnp.maximum(jnp.dot(mx, w1t, preferred_element_type=jnp.float32), 0.0))
        out = jnp.dot(h, w2t, preferred_element_type=jnp.float32)
        o_ref[...] = jax.nn.sigmoid(out).astype(o_ref.dtype)


def channel_attention(x, w1, w2, *, hw_tile_bytes=12 * 1024 * 1024):
    """x: (N, C, H, W); w1: (Cr, C, 1, 1); w2: (C, Cr, 1, 1) -> (N, C, 1, 1)."""
    if not jnp.issubdtype(x.dtype, jnp.floating):
        raise ValueError("channel_attention expects a floating-point input")

    n, c, h, w = x.shape
    cr = w1.shape[0]
    hw = h * w

    # Free NCHW reshape (no HBM data movement): channels -> sublanes,
    # H*W -> lanes.
    x_flat = x.reshape(n, c, hw)

    # 1x1 convs (no bias) as dense matmuls: y = v @ W.T
    w1t = w1.reshape(cr, c).T  # (C, Cr)
    w2t = w2.reshape(c, cr).T  # (Cr, C)

    # Batch tile: 8 rows when the batch allows, else the whole batch
    # (the (tn, C) output block needs tn % 8 == 0 or tn == N).
    tn = 8 if (n % 8 == 0) else n

    # Spatial tile: the full H*W when one buffer fits the budget (single
    # step), else the largest multiple of 128 lanes under `hw_tile_bytes`.
    itemsize = jnp.dtype(x.dtype).itemsize
    row_bytes = tn * c * itemsize
    if hw * row_bytes <= hw_tile_bytes:
        t_hw = hw                                   # full extent: always legal
    else:
        t_hw = max(128, (hw_tile_bytes // row_bytes) // 128 * 128)

    hw_tiles = pl.cdiv(hw, t_hw)
    ragged = (hw % t_hw) != 0        # last block partial -> mask in kernel

    # x stream spec; go 3-deep when there are many small HW steps.
    n_buf = 2
    x_spec = pl.BlockSpec((tn, c, t_hw), lambda i, j: (i, 0, j))
    if hw_tiles >= 8 and hasattr(pl, "Buffered"):
        try:
            x_spec = pl.BlockSpec((tn, c, t_hw), lambda i, j: (i, 0, j),
                                  pipeline_mode=pl.Buffered(3))
            n_buf = 3
        except TypeError:
            pass  # older JAX: keep default double-buffering

    x_tile_bytes = tn * c * t_hw * itemsize
    vmem_limit = int(min(48 * 1024 * 1024,
                         max(32 * 1024 * 1024,
                             n_buf * x_tile_bytes + 2 * 1024 * 1024)))

    kernel = functools.partial(
        _channel_attention_kernel, hw_total=hw, t_hw=t_hw, ragged=ragged)

    out = pl.pallas_call(
        kernel,
        out_shape=jax.ShapeDtypeStruct((n, c), x.dtype),
        grid_spec=pltpu.PrefetchScalarGridSpec(
            num_scalar_prefetch=0,
            grid=(n // tn, hw_tiles),
            in_specs=[
                x_spec,
                # Constant block index -> weights stay VMEM-resident.
                pl.BlockSpec((c, cr), lambda i, j: (0, 0)),
                pl.BlockSpec((cr, c), lambda i, j: (0, 0)),
            ],
            out_specs=pl.BlockSpec((tn, c), lambda i, j: (i, 0)),
            scratch_shapes=[
                pltpu.VMEM((tn, c), jnp.float32),  # spatial sum accumulator
                pltpu.VMEM((tn, c), x.dtype),      # spatial max accumulator
            ],
        ),
        compiler_params=pltpu.CompilerParams(
            # Batch tiles are independent (megacore); HW is the reduction.
            dimension_semantics=("parallel", "arbitrary"),
            vmem_limit_bytes=vmem_limit,
        ),
    )(x_flat, w1t, w2t)

    return out.reshape(n, c, 1, 1)


def _reference(x, w1, w2):
    # Pure-JAX reference of the PyTorch forward.
    n, c, h, w = x.shape
    cr = w1.shape[0]
    w1m = w1.reshape(cr, c)
    w2m = w2.reshape(c, cr)

    def mlp(v):  # v: (N, C)
        return jnp.maximum(v @ w1m.T, 0.0) @ w2m.T

    avg = jnp.mean(x, axis=(2, 3))
    mx = jnp.max(x, axis=(2, 3))
    return jax.nn.sigmoid(mlp(avg) + mlp(mx)).reshape(n, c, 1, 1)


if __name__ == "__main__":
    key = jax.random.PRNGKey(0)

    # Config 1: ChannelAttention(in_planes=64, ratio=16), 16x16 spatial
    #           (single HW step path).
    # Config 2: odd spatial extent + tiny HW tile budget -> multi-step
    #           accumulation, partial last block, last-tile-only masking.
    # Config 3: batch 16 -> tn=8 with two parallel batch tiles; non-128
    #           full-extent lane dim.
    # Config 4: many small HW steps -> deep (Buffered(3)) streaming path,
    #           divisible (non-ragged) multi-step reduction.
    configs = [
        dict(n=2, c=64, h=16, w=16, ratio=16, hw_tile_bytes=12 * 1024 * 1024),
        dict(n=2, c=64, h=15, w=15, ratio=16, hw_tile_bytes=64 * 1024),
        dict(n=16, c=32, h=9, w=7, ratio=8, hw_tile_bytes=12 * 1024 * 1024),
        dict(n=2, c=64, h=32, w=32, ratio=16, hw_tile_bytes=64 * 1024),
    ]

    for cfg in configs:
        n, c, h, w, ratio = cfg["n"], cfg["c"], cfg["h"], cfg["w"], cfg["ratio"]
        cr = c // ratio
        key, kx, k1, k2 = jax.random.split(key, 4)
        x = jax.random.normal(kx, (n, c, h, w), dtype=jnp.float32)
        # Conv2d(C, Cr, 1, bias=False): (Cr, C, 1, 1); Conv2d(Cr, C, 1): (C, Cr, 1, 1)
        w1 = jax.random.normal(k1, (cr, c, 1, 1), dtype=jnp.float32) * 0.1
        w2 = jax.random.normal(k2, (c, cr, 1, 1), dtype=jnp.float32) * 0.1

        out = channel_attention(x, w1, w2, hw_tile_bytes=cfg["hw_tile_bytes"])
        out = jax.block_until_ready(out)

        ref = _reference(x, w1, w2)
        assert out.shape == (n, c, 1, 1)
        assert jnp.allclose(out, ref, atol=1e-5, rtol=1e-5), "mismatch vs reference"

    print("KERNEL_OK")
</pallas_src>

<mosaic_0001>
module attributes {stable_mosaic.version = 11 : i64} {
  func.func @_channel_attention_kernel(%arg0: i32, %arg1: i32, %arg2: memref<2x64x256xf32, #tpu.memory_space<vmem>>, %arg3: memref<64x4xf32, #tpu.memory_space<vmem>>, %arg4: memref<4x64xf32, #tpu.memory_space<vmem>>, %arg5: memref<2x64xf32, #tpu.memory_space<vmem>>, %arg6: memref<2x64xf32, #tpu.memory_space<vmem>>, %arg7: memref<2x64xf32, #tpu.memory_space<vmem>>) attributes {dimension_semantics = [#tpu.dimension_semantics<parallel>, #tpu.dimension_semantics<arbitrary>], iteration_bounds = array<i64: 1, 1>, scalar_prefetch = 0 : i64, scratch_operands = 2 : i64, tpu.core_type = #tpu.core_type<tc>, window_params = [{transform_indices = @transform_0, window_bounds = array<i64: 2, 64, 256>}, {pipeline_mode = #tpu.pipeline_mode<synchronous>, transform_indices = @transform_1, window_bounds = array<i64: 64, 4>}, {pipeline_mode = #tpu.pipeline_mode<synchronous>, transform_indices = @transform_2, window_bounds = array<i64: 4, 64>}, {transform_indices = @transform_3, window_bounds = array<i64: 2, 64>}]} {
    %c0_i32 = arith.constant 0 : i32
    %0 = arith.cmpi eq, %arg1, %c0_i32 : i32
    %1 = arith.extui %0 : i1 to i32
    %c0_i32_0 = arith.constant 0 : i32
    %2 = arith.cmpi ne, %1, %c0_i32_0 : i32
    scf.if %2 {
      %cst_14 = arith.constant 0.000000e+00 : f32
      %15 = vector.broadcast %cst_14 : f32 to vector<2x64xf32>
      %c0_15 = arith.constant 0 : index
      %c0_16 = arith.constant 0 : index
      %16 = vector.load %arg6[%c0_15, %c0_16] : memref<2x64xf32, #tpu.memory_space<vmem>>, vector<2x64xf32>
      tpu.vector_store %arg6[%c0_15, %c0_16], %15 {strides = array<i32>} : memref<2x64xf32, #tpu.memory_space<vmem>>, vector<2x64xf32>,
      %cst_17 = arith.constant 0xFF800000 : f32
      %17 = vector.broadcast %cst_17 : f32 to vector<2x64xf32>
      %c0_18 = arith.constant 0 : index
      %c0_19 = arith.constant 0 : index
      %18 = vector.load %arg7[%c0_18, %c0_19] : memref<2x64xf32, #tpu.memory_space<vmem>>, vector<2x64xf32>
      tpu.vector_store %arg7[%c0_18, %c0_19], %17 {strides = array<i32>} : memref<2x64xf32, #tpu.memory_space<vmem>>, vector<2x64xf32>,
    } else {
    }
    %c0 = arith.constant 0 : index
    %c0_1 = arith.constant 0 : index
    %c0_2 = arith.constant 0 : index
    %3 = vector.load %arg2[%c0, %c0_1, %c0_2] : memref<2x64x256xf32, #tpu.memory_space<vmem>>, vector<2x64x256xf32>
    %c0_3 = arith.constant 0 : index
    %c0_4 = arith.constant 0 : index
    %4 = vector.load %arg6[%c0_3, %c0_4] : memref<2x64xf32, #tpu.memory_space<vmem>>, vector<2x64xf32>
    %cst = arith.constant dense<0.000000e+00> : vector<2x64xf32>
    %5 = vector.multi_reduction <add>, %3, %cst [2] : vector<2x64x256xf32> to vector<2x64xf32>
    %6 = arith.addf %4, %5 : vector<2x64xf32>
    %c0_5 = arith.constant 0 : index
    %c0_6 = arith.constant 0 : index
    %7 = vector.load %arg6[%c0_5, %c0_6] : memref<2x64xf32, #tpu.memory_space<vmem>>, vector<2x64xf32>
    tpu.vector_store %arg6[%c0_5, %c0_6], %6 {strides = array<i32>} : memref<2x64xf32, #tpu.memory_space<vmem>>, vector<2x64xf32>,
    %c0_7 = arith.constant 0 : index
    %c0_8 = arith.constant 0 : index
    %8 = vector.load %arg7[%c0_7, %c0_8] : memref<2x64xf32, #tpu.memory_space<vmem>>, vector<2x64xf32>
    %cst_9 = arith.constant dense<0xFF800000> : vector<2x64xf32>
    %9 = vector.multi_reduction <maximumf>, %3, %cst_9 [2] : vector<2x64x256xf32> to vector<2x64xf32>
    %10 = arith.maximumf %8, %9 : vector<2x64xf32>
    %c0_10 = arith.constant 0 : index
    %c0_11 = arith.constant 0 : index
    %11 = vector.load %arg7[%c0_10, %c0_11] : memref<2x64xf32, #tpu.memory_space<vmem>>, vector<2x64xf32>
    tpu.vector_store %arg7[%c0_10, %c0_11], %10 {strides = array<i32>} : memref<2x64xf32, #tpu.memory_space<vmem>>, vector<2x64xf32>,
    %c0_i32_12 = arith.constant 0 : i32
    %12 = arith.cmpi eq, %arg1, %c0_i32_12 : i32
    %13 = arith.extui %12 : i1 to i32
    %c0_i32_13 = arith.constant 0 : i32
    %14 = arith.cmpi ne, %13, %c0_i32_13 : i32
    scf.if %14 {
      %c0_14 = arith.constant 0 : index
      %c0_15 = arith.constant 0 : index
      %15 = vector.load %arg6[%c0_14, %c0_15] : memref<2x64xf32, #tpu.memory_space<vmem>>, vector<2x64xf32>
      %cst_16 = arith.constant 2.560000e+02 : f32
      %16 = vector.broadcast %cst_16 : f32 to vector<2x64xf32>
      %17 = arith.divf %15, %16 : vector<2x64xf32>
      %c0_17 = arith.constant 0 : index
      %c0_18 = arith.constant 0 : index
      %18 = vector.load %arg7[%c0_17, %c0_18] : memref<2x64xf32, #tpu.memory_space<vmem>>, vector<2x64xf32>
      %c0_19 = arith.constant 0 : index
      %c0_20 = arith.constant 0 : index
      %19 = vector.load %arg3[%c0_19, %c0_20] : memref<64x4xf32, #tpu.memory_space<vmem>>, vector<64x4xf32>
      %c0_21 = arith.constant 0 : index
      %c0_22 = arith.constant 0 : index
      %20 = vector.load %arg4[%c0_21, %c0_22] : memref<4x64xf32, #tpu.memory_space<vmem>>, vector<4x64xf32>
      %cst_23 = arith.constant dense<0.000000e+00> : vector<2x4xf32>
      %21 = tpu.matmul %17, %19, %cst_23 {dimension_numbers = #tpu.dot_dimension_numbers<[1], [0], [0], [1], [0, 0, 1, 1], [], []>} : vector<2x64xf32>, vector<64x4xf32>, vector<2x4xf32> -> vector<2x4xf32>
      %cst_24 = arith.constant 0.000000e+00 : f32
      %22 = vector.broadcast %cst_24 : f32 to vector<2x4xf32>
      %23 = arith.maximumf %21, %22 : vector<2x4xf32>
      %cst_25 = arith.constant dense<0.000000e+00> : vector<2x4xf32>
      %24 = tpu.matmul %18, %19, %cst_25 {dimension_numbers = #tpu.dot_dimension_numbers<[1], [0], [0], [1], [0, 0, 1, 1], [], []>} : vector<2x64xf32>, vector<64x4xf32>, vector<2x4xf32> -> vector<2x4xf32>
      %cst_26 = arith.constant 0.000000e+00 : f32
      %25 = vector.broadcast %cst_26 : f32 to vector<2x4xf32>
      %26 = arith.maximumf %24, %25 : vector<2x4xf32>
      %27 = arith.addf %23, %26 : vector<2x4xf32>
      %cst_27 = arith.constant dense<0.000000e+00> : vector<2x64xf32>
      %28 = tpu.matmul %27, %20, %cst_27 {dimension_numbers = #tpu.dot_dimension_numbers<[1], [0], [0], [1], [0, 0, 1, 1], [], []>} : vector<2x4xf32>, vector<4x64xf32>, vector<2x64xf32> -> vector<2x64xf32>
      %29 = arith.negf %28 : vector<2x64xf32>
      %30 = math.exp %29 : vector<2x64xf32>
      %cst_28 = arith.constant 1.000000e+00 : f32
      %31 = vector.broadcast %cst_28 : f32 to vector<2x64xf32>
      %32 = arith.addf %31, %30 : vector<2x64xf32>
      %33 = arith.divf %31, %32 : vector<2x64xf32>
      %c0_29 = arith.constant 0 : index
      %c0_30 = arith.constant 0 : index
      %34 = vector.load %arg5[%c0_29, %c0_30] : memref<2x64xf32, #tpu.memory_space<vmem>>, vector<2x64xf32>
      tpu.vector_store %arg5[%c0_29, %c0_30], %33 {strides = array<i32>} : memref<2x64xf32, #tpu.memory_space<vmem>>, vector<2x64xf32>,
    } else {
    }
    return
  }
  func.func @transform_0(%arg0: i32, %arg1: i32) -> (i32, i32, i32) {
    %c0_i32 = arith.constant 0 : i32
    %c0_i32_0 = arith.constant 0 : i32
    return %arg0, %c0_i32, %arg1 : i32, i32, i32
  }
  func.func @transform_1(%arg0: i32, %arg1: i32) -> (i32, i32) {
    %c0_i32 = arith.constant 0 : i32
    %c0_i32_0 = arith.constant 0 : i32
    %c0_i32_1 = arith.constant 0 : i32
    return %c0_i32, %c0_i32_0 : i32, i32
  }
  func.func @transform_2(%arg0: i32, %arg1: i32) -> (i32, i32) {
    %c0_i32 = arith.constant 0 : i32
    %c0_i32_0 = arith.constant 0 : i32
    %c0_i32_1 = arith.constant 0 : i32
    return %c0_i32, %c0_i32_0 : i32, i32
  }
  func.func @transform_3(%arg0: i32, %arg1: i32) -> (i32, i32) {
    %c0_i32 = arith.constant 0 : i32
    %c0_i32_0 = arith.constant 0 : i32
    return %arg0, %c0_i32 : i32, i32
  }
}

</mosaic_0001>

<bundles_post_ra>
// kernel: tpu_custom_call.1
= control target key start
LH: loop header
LB: loop body
LE: loop exit
PB: predicated region body
PF: predicated region fallthrough
CT: control target
= control target key end

     0   :  { %8 = vsyncpa [#allocation5], 0  ;;  %s718_s0 = inlined_call_operand.hbm [shape: f32[2,64,256], index: 0, kind: input, shape index: {}]   ;;  %s719_s1 = inlined_call_operand.vmem [shape: f32[64,4], index: 1, kind: input, shape index: {}]   ;;  %s720_s2 = inlined_call_operand.vmem [shape: f32[4,64], index: 2, kind: input, shape index: {}]   ;;  %s721_s3 = inlined_call_operand.hbm [shape: f32[2,64], index: 3, kind: output, shape index: {}]  }
   0x1   :  { %9 = vsyncpa [#allocation6], 0  ;;  %s14_s14 = sshll.u32 %s718_s0, 4  ;;  %s493_s15 = smov [#allocation4]   ;;  %s15_s14 = int_to_ptr.hbm [resolvable:$true] %s14_s14 }
   0x2   :  { %s16_s16 = sshll.u32 %s493_s15, 4  ;;  %s494_s17 = smov 256   ;;  %s17_s16 = int_to_ptr.vmem [resolvable:$true] %s16_s16 }
   0x3   :  { %s495_s18 = smov 16  }
   0x4   :  { %22 = dma.hbm_to_vmem [thread:$0]  %s15_s14, 4096, %s17_s16, [#allocation5], %s494_s17, %s494_s17, %s495_s18  }
   0x5   :  { %489 = dma.done.wait [#allocation5], 4096  }
   0x6   :  { %490 = vsyncadd [#allocation5], 4294963200  ;;  %v54_v0 = vld [vmem:[#allocation4 + $0x80] sm:$0xff]  ;;  %v55_v1 = vld [vmem:[#allocation4 + $0x88] sm:$0xff]  ;;  %vm35_vm0 = vcmask 517120   ;;  %vm140_vm1 = vcmask 130112  }
   0x7   :  { %v42_v2 = vld [vmem:[#allocation4 + $0x20] sm:$0xff]  ;;  %v95_v3 = vadd.f32 %v55_v1, %v54_v0  ;;  %v43_v4 = vld [vmem:[#allocation4 + $0x28] sm:$0xff]  ;;  %v56_v9 = vld [vmem:[#allocation4 + $0x90] sm:$0xff]  ;;  %v212_v25 = vmax.f32 %v54_v0, %v55_v1  ;;  %vm144_vm2 = vcmask 195712   ;;  %vm148_vm3 = vcmask 261312   ;;  %s413_s11 = sshll.u32 %s721_s3, 4  ;;  %s414_s11 = int_to_ptr.hbm [resolvable:$true] %s413_s11 }
   0x8   :  { %v38_v5 = vld [vmem:[#allocation4] sm:$0xff]  ;;  %v39_v6 = vld [vmem:[#allocation4 + $0x8] sm:$0xff]  ;;  %v77_v7 = vadd.f32 %v43_v4, %v42_v2  ;;  %v57_v10 = vld [vmem:[#allocation4 + $0x98] sm:$0xff]  ;;  %v194_v33 = vmax.f32 %v42_v2, %v43_v4  ;;  %vm152_vm4 = vcmask 326912   ;;  %vm156_vm5 = vcmask 392512  }
   0x9   :  { %v71_v8 = vadd.f32 %v39_v6, %v38_v5  ;;  %96 = vadd.xlane.f32.xlu1 %v95_v3  ;;  %v58_v11 = vld [vmem:[#allocation4 + $0xa0] sm:$0xff]  ;;  %v59_v12 = vld [vmem:[#allocation4 + $0xa8] sm:$0xff]  ;;  %v40_v13 = vld [vmem:[#allocation4 + $0x10] sm:$0xff]  ;;  %v98_v15 = vadd.f32 %v57_v10, %v56_v9  ;;  %v188_v23 = vmax.f32 %v38_v5, %v39_v6  ;;  %v215_v26 = vmax.f32 %v56_v9, %v57_v10 }
   0xa   :  { %78 = vadd.xlane.f32.xlu2 %v77_v7  ;;  %v41_v14 = vld [vmem:[#allocation4 + $0x18] sm:$0xff]  ;;  %v101_v16 = vadd.f32 %v59_v12, %v58_v11  ;;  %v60_v18 = vld [vmem:[#allocation4 + $0xb0] sm:$0xff]  ;;  %v62_v28 = vld [vmem:[#allocation4 + $0xc0] sm:$0xff]  ;;  %v218_v41 = vmax.f32 %v58_v11, %v59_v12  ;;  %v496_v12 = vmov 0.0   ;;  %vm160_vm6 = vcmask 458112  }
   0xb   :  { %72 = vadd.xlane.f32.xlu0 %v71_v8  ;;  %v74_v17 = vadd.f32 %v41_v14, %v40_v13  ;;  %v61_v19 = vld [vmem:[#allocation4 + $0xb8] sm:$0xff]  ;;  %v44_v20 = vld [vmem:[#allocation4 + $0x30] sm:$0xff]  ;;  %v191_v27 = vmax.f32 %v40_v13, %v41_v14  ;;  %v63_v29 = vld [vmem:[#allocation4 + $0xc8] sm:$0xff]  ;;  %36 = vst.msk [vmem:[#allocation2] sm:$0x3] %vm35_vm0, %v496_v12  ;;  %vm164_vm7 = vcmask 523712  }
   0xc   :  { %v45_v21 = vld [vmem:[#allocation4 + $0x38] sm:$0xff]  ;;  %v104_v22 = vadd.f32 %v61_v19, %v60_v18  ;;  %v46_v30 = vld [vmem:[#allocation4 + $0x40] sm:$0xff]  ;;  %v47_v31 = vld [vmem:[#allocation4 + $0x48] sm:$0xff]  ;;  %v107_v32 = vadd.f32 %v63_v29, %v62_v28  ;;  %v221_v44 = vmax.f32 %v60_v18, %v61_v19  ;;  %v224_v50 = vmax.f32 %v62_v28, %v63_v29 }
   0xd   :  { %v80_v24 = vadd.f32 %v45_v21, %v44_v20  ;;  %v83_v34 = vadd.f32 %v47_v31, %v46_v30  ;;  %v48_v35 = vld [vmem:[#allocation4 + $0x50] sm:$0xff]  ;;  %v49_v36 = vld [vmem:[#allocation4 + $0x58] sm:$0xff]  ;;  %v50_v42 = vld [vmem:[#allocation4 + $0x60] sm:$0xff]  ;;  %v197_v46 = vmax.f32 %v44_v20, %v45_v21  ;;  %v200_v49 = vmax.f32 %v46_v30, %v47_v31 }
   0xe   :  { %v64_v37 = vld [vmem:[#allocation4 + $0xd0] sm:$0xff]  ;;  %v65_v38 = vld [vmem:[#allocation4 + $0xd8] sm:$0xff]  ;;  %v86_v39 = vadd.f32 %v49_v36, %v48_v35  ;;  %v51_v43 = vld [vmem:[#allocation4 + $0x68] sm:$0xff]  ;;  %v203_v57 = vmax.f32 %v48_v35, %v49_v36  ;;  %v497_v28 = vmov -inf   ;;  %vm181_vm8 = vcmask 1041409  }
   0xf   :  { %v110_v40 = vadd.f32 %v65_v38, %v64_v37  ;;  %v89_v45 = vadd.f32 %v51_v43, %v50_v42  ;;  %v66_v47 = vld [vmem:[#allocation4 + $0xe0] sm:$0xff]  ;;  %v67_v48 = vld [vmem:[#allocation4 + $0xe8] sm:$0xff]  ;;  %v68_v52 = vld [vmem:[#allocation4 + $0xf0] sm:$0xff]  ;;  %v206_v59 = vmax.f32 %v50_v42, %v51_v43  ;;  %v227_v60 = vmax.f32 %v64_v37, %v65_v38  ;;  %37 = vst.msk [vmem:[#allocation3] sm:$0x3] %vm35_vm0, %v497_v28 }
  0x10   :  { %v113_v51 = vadd.f32 %v67_v48, %v66_v47  ;;  %v69_v53 = vld [vmem:[#allocation4 + $0xf8] sm:$0xff]  ;;  %v52_v54 = vld [vmem:[#allocation4 + $0x70] sm:$0xff]  ;;  %v230_v61 = vmax.f32 %v66_v47, %v67_v48  ;;  %v304_v18 = vld [vmem:[%s719_s1 + $0x28] sm:$0xff]  ;;  %vm308_vm10 = vcmask 523264   ;;  %vm362_vm11 = vcmask 1043456  }
  0x11   :  { %99 = vadd.xlane.f32.xlu1 %v98_v15  ;;  %v53_v55 = vld [vmem:[#allocation4 + $0x78] sm:$0xff]  ;;  %v116_v56 = vadd.f32 %v69_v53, %v68_v52  ;;  %v233_v62 = vmax.f32 %v68_v52, %v69_v53  ;;  %vm358_vm12 = vcmask 31744  }
  0x12   :  { %102 = vadd.xlane.f32.xlu2 %v101_v16  ;;  %v92_v58 = vadd.f32 %v53_v55, %v52_v54  ;;  %v209_v63 = vmax.f32 %v52_v54, %v53_v55  ;;  %v306_v16 = vld [vmem:[%s719_s1 + $0x38] sm:$0xff]  ;;  %v303_v20 = vld [vmem:[%s719_s1 + $0x20] sm:$0xff] }
  0x13   :  { %75 = vadd.xlane.f32.xlu0 %v74_v17  ;;  %320 = vmatpush.msra.mxu0 %v306_v16  ;;  %v305_v17 = vld [vmem:[%s719_s1 + $0x30] sm:$0xff] }
  0x14   :  { %344 = vmatpush.msra.mxu1 %v306_v16 }
  0x15   :  { %321 = vmatpush.msra.mxu0 %v305_v17 }
  0x16   :  { %345 = vmatpush.msra.mxu1 %v305_v17 }
  0x17   :  { %322 = vmatpush.msra.mxu0 %v304_v18 }
  0x18   :  { %346 = vmatpush.msra.mxu1 %v304_v18 }
  0x19   :  { %105 = vadd.xlane.f32.xlu1 %v104_v22  ;;  %323 = vmatpush.msra.mxu0 %v303_v20 }
  0x1a   :  { %189 = vmax.xlane.f32.xlu2 %v188_v23  ;;  %347 = vmatpush.msra.mxu1 %v303_v20  ;;  %v302_v23 = vld [vmem:[%s719_s1 + $0x18] sm:$0xff]  ;;  %v70_v20 = vld [vmem:[#allocation2] sm:$0x3] }
  0x1b   :  { %81 = vadd.xlane.f32.xlu0 %v80_v24  ;;  %324 = vmatpush.msra.mxu0 %v302_v23  ;;  %v301_v24 = vld [vmem:[%s719_s1 + $0x10] sm:$0xff] }
  0x1c   :  { %348 = vmatpush.msra.mxu1 %v302_v23 }
  0x1d   :  { %325 = vmatpush.msra.mxu0 %v301_v24 }
  0x1e   :  { %349 = vmatpush.msra.mxu1 %v301_v24 }
  0x21   :  { %213 = vmax.xlane.f32.xlu1 %v212_v25  ;;  %v135_v25 = vlaneseq }
  0x22   :  { %216 = vmax.xlane.f32.xlu2 %v215_v26  ;;  %v300_v26 = vld [vmem:[%s719_s1 + $0x8] sm:$0xff] }
  0x23   :  { %192 = vmax.xlane.f32.xlu0 %v191_v27  ;;  %v299_v27 = vld [vmem:[%s719_s1] sm:$0xff]  ;;  %326 = vmatpush.msra.mxu0 %v300_v26  ;;  %v587_v30 = vand.u32 127, %v135_v25 }
  0x24   :  { %350 = vmatpush.msra.mxu1 %v300_v26 }
  0x25   :  { %327 = vmatpush.msra.mxu0 %v299_v27  ;;  %v597_v36 = vadd.s32 4294967272, %v587_v30  ;;  %v600_v37 = vadd.s32 4294967280, %v587_v30  ;;  %v612_v42 = vadd.s32 4294967256, %v587_v30 }
  0x26   :  { %351 = vmatpush.msra.mxu1 %v299_v27 }
  0x29   :  { %108 = vadd.xlane.f32.xlu1 %v107_v32 }
  0x2a   :  { %195 = vmax.xlane.f32.xlu2 %v194_v33  ;;  %v592_v33 = vadd.s32 4294967288, %v587_v30 }
  0x2b   :  { %84 = vadd.xlane.f32.xlu0 %v83_v34  ;;  %v498_v34 = vmov 256.0  }
  0x2c   :  { %435 = vrcp.f32 %v498_v34 }
  0x31   :  { %87 = vadd.xlane.f32.xlu1 %v86_v39  ;;  %v605_v39 = vadd.s32 4294967264, %v587_v30 }
  0x32   :  { %111 = vadd.xlane.f32.xlu2 %v110_v40 }
  0x33   :  { %219 = vmax.xlane.f32.xlu0 %v218_v41 }
  0x39   :  { %222 = vmax.xlane.f32.xlu1 %v221_v44 }
  0x3a   :  { %90 = vadd.xlane.f32.xlu2 %v89_v45  ;;  %v616_v45 = vpop.eup %435 }
  0x3b   :  { %198 = vmax.xlane.f32.xlu0 %v197_v46  ;;  %vm295_vm9 = vweird.f32 %v616_v45 }
  0x41   :  { %201 = vmax.xlane.f32.xlu1 %v200_v49 }
  0x42   :  { %225 = vmax.xlane.f32.xlu2 %v224_v50  ;;  %v626_v50 = vadd.s32 4294967248, %v587_v30 }
  0x43   :  { %114 = vadd.xlane.f32.xlu0 %v113_v51 }
  0x49   :  { %117 = vadd.xlane.f32.xlu1 %v116_v56 }
  0x4a   :  { %204 = vmax.xlane.f32.xlu2 %v203_v57  ;;  %v640_v57 = vadd.s32 4294967240, %v587_v30 }
  0x4b   :  { %93 = vadd.xlane.f32.xlu0 %v92_v58  ;;  %v291_v58 = vmul.f32 256.0, %v616_v45 }
  0x51   :  { %207 = vmax.xlane.f32.xlu1 %v206_v59 }
  0x52   :  { %231 = vmax.xlane.f32.xlu2 %v230_v61 }
  0x53   :  { %228 = vmax.xlane.f32.xlu0 %v227_v60 }
  0x59   :  { %234 = vmax.xlane.f32.xlu1 %v233_v62 }
  0x5b   :  { %210 = vmax.xlane.f32.xlu0 %v209_v63 }
  0x7c   :  { %v523_v0 = vpop.xlane.xlu1 %96 }
  0x7d   :  { %v525_v1 = vpop.xlane.xlu2 %78  ;;  %v166_v41 = vperm.slane %v523_v0, %v587_v30 }
  0x7e   :  { %v527_v2 = vpop.xlane.xlu0 %72  ;;  %v143_v51 = vperm.slane %v525_v1, %v600_v37 }
  0x7f   :  { %v137_v46 = vperm.slane %v527_v2, %v587_v30 }
  0x84   :  { %v529_v3 = vpop.xlane.xlu1 %99 }
  0x85   :  { %v531_v4 = vpop.xlane.xlu2 %102  ;;  %v167_v35 = vperm.slane %v529_v3, %v592_v33 }
  0x86   :  { %v533_v5 = vpop.xlane.xlu0 %75  ;;  %v169_v47 = vperm.slane %v531_v4, %v600_v37 }
  0x87   :  { %v139_v38 = vperm.slane %v533_v5, %v592_v33  ;;  %v168_v48 = vsel %vm140_vm1, %v167_v35, %v166_v41 }
  0x88   :  { %v170_v59 = vsel %vm144_vm2, %v169_v47, %v168_v48 }
  0x89   :  { %v141_v52 = vsel %vm140_vm1, %v139_v38, %v137_v46 }
  0x8a   :  { %v145_v63 = vsel %vm144_vm2, %v143_v51, %v141_v52 }
  0x8c   :  { %v535_v6 = vpop.xlane.xlu1 %105 }
  0x8d   :  { %v537_v7 = vpop.xlane.xlu2 %189  ;;  %v171_v49 = vperm.slane %v535_v6, %v597_v36 }
  0x8e   :  { %v539_v8 = vpop.xlane.xlu0 %81  ;;  %v252_v41 = vperm.slane %v537_v7, %v587_v30 }
  0x8f   :  { %v147_v53 = vperm.slane %v539_v8, %v597_v36  ;;  %v172_v62 = vsel %vm148_vm3, %v171_v49, %v170_v59  ;;  %v187_v59 = vld [vmem:[#allocation3] sm:$0x3] }
  0x91   :  { %v149_v1 = vsel %vm148_vm3, %v147_v53, %v145_v63 }
  0x94   :  { %v541_v9 = vpop.xlane.xlu1 %213 }
  0x95   :  { %v543_v10 = vpop.xlane.xlu2 %216  ;;  %v267_v26 = vperm.slane %v541_v9, %v587_v30 }
  0x96   :  { %v545_v11 = vpop.xlane.xlu0 %192  ;;  %v268_v27 = vperm.slane %v543_v10, %v592_v33 }
  0x97   :  { %v253_v9 = vperm.slane %v545_v11, %v592_v33 }
  0x9c   :  { %v548_v13 = vpop.xlane.xlu1 %108 }
  0x9d   :  { %v550_v14 = vpop.xlane.xlu2 %195  ;;  %v173_v54 = vperm.slane %v548_v13, %v605_v39  ;;  %v292_v13 = vsub.f32 1.0, %v291_v58 }
  0x9e   :  { %v552_v15 = vpop.xlane.xlu0 %84 }
  0x9f   :  { %v151_v55 = vperm.slane %v552_v15, %v605_v39  ;;  %v174_v2 = vsel %vm152_vm4, %v173_v54, %v172_v62  ;;  %v293_v24 = vmul.f32 %v616_v45, %v292_v13 }
  0xa1   :  { %v153_v4 = vsel %vm152_vm4, %v151_v55, %v149_v1  ;;  %v294_v38 = vadd.f32 %v616_v45, %v293_v24 }
  0xa3   :  { %v296_v33 = vsel %vm295_vm9, %v616_v45, %v294_v38 }
  0xa4   :  { %v563_v19 = vpop.xlane.xlu1 %87 }
  0xa5   :  { %v568_v21 = vpop.xlane.xlu2 %111  ;;  %v155_v60 = vperm.slane %v563_v19, %v612_v42 }
  0xa6   :  { %v570_v22 = vpop.xlane.xlu0 %219  ;;  %v175_v56 = vperm.slane %v568_v21, %v612_v42 }
  0xa7   :  { %v157_v15 = vsel %vm156_vm5, %v155_v60, %v153_v4  ;;  %v270_v28 = vperm.slane %v570_v22, %v600_v37  ;;  %v269_v22 = vsel %vm140_vm1, %v268_v27, %v267_v26 }
  0xa8   :  { %v176_v5 = vsel %vm156_vm5, %v175_v56, %v174_v2 }
  0xa9   :  { %v271_v47 = vsel %vm144_vm2, %v270_v28, %v269_v22 }
  0xac   :  { %v585_v29 = vpop.xlane.xlu1 %222 }
  0xad   :  { %v91_v31 = vpop.xlane.xlu2 %90  ;;  %v272_v34 = vperm.slane %v585_v29, %v597_v36 }
  0xae   :  { %v589_v32 = vpop.xlane.xlu0 %198  ;;  %v159_v0 = vperm.slane %v91_v31, %v626_v50 }
  0xaf   :  { %v257_v7 = vperm.slane %v589_v32, %v597_v36  ;;  %v273_v11 = vsel %vm148_vm3, %v272_v34, %v271_v47 }
  0xb0   :  { %v161_v18 = vsel %vm160_vm6, %v159_v0, %v157_v15 }
  0xb4   :  { %v607_v40 = vpop.xlane.xlu1 %201 }
  0xb5   :  { %v614_v43 = vpop.xlane.xlu2 %225  ;;  %v259_v30 = vperm.slane %v607_v40, %v605_v39 }
  0xb6   :  { %v115_v44 = vpop.xlane.xlu0 %114  ;;  %v274_v10 = vperm.slane %v614_v43, %v605_v39  ;;  %v254_v43 = vsel %vm140_vm1, %v253_v9, %v252_v41 }
  0xb7   :  { %v177_v61 = vperm.slane %v115_v44, %v626_v50  ;;  %v255_v44 = vperm.slane %v550_v14, %v600_v37 }
  0xb8   :  { %v275_v48 = vsel %vm152_vm4, %v274_v10, %v273_v11 }
  0xb9   :  { %v178_v16 = vsel %vm160_vm6, %v177_v61, %v176_v5  ;;  %v256_v49 = vsel %vm144_vm2, %v255_v44, %v254_v43 }
  0xba   :  { %v258_v39 = vsel %vm148_vm3, %v257_v7, %v256_v49 }
  0xbb   :  { %v260_v52 = vsel %vm152_vm4, %v259_v30, %v258_v39 }
  0xbc   :  { %v118_v3 = vpop.xlane.xlu1 %117 }
  0xbd   :  { %v179_v6 = vperm.slane %v118_v3, %v640_v57  ;;  %v205_v8 = vpop.xlane.xlu2 %204 }
  0xbe   :  { %v94_v12 = vpop.xlane.xlu0 %93  ;;  %v261_v14 = vperm.slane %v205_v8, %v612_v42 }
  0xbf   :  { %v163_v17 = vperm.slane %v94_v12, %v640_v57  ;;  %v180_v19 = vsel %vm164_vm7, %v179_v6, %v178_v16 }
  0xc1   :  { %v165_v21 = vsel %vm164_vm7, %v163_v17, %v161_v18 }
  0xc2   :  { %v182_v23 = vsel %vm181_vm8, %v180_v19, %v165_v21 }
  0xc3   :  { %v184_v25 = vadd.f32 %v182_v23, %v70_v20 }
  0xc4   :  { %v208_v31 = vpop.xlane.xlu1 %207 }
  0xc5   :  { %186 = vst.msk [vmem:[#allocation2] sm:$0x3] %vm35_vm0, %v184_v25  ;;  %v232_v46 = vpop.xlane.xlu2 %231  ;;  %v263_v51 = vperm.slane %v208_v31, %v626_v50 }
  0xc6   :  { %v229_v35 = vpop.xlane.xlu0 %228  ;;  %v278_v37 = vperm.slane %v232_v46, %v626_v50 }
  0xc7   :  { %v276_v29 = vperm.slane %v229_v35, %v612_v42  ;;  %v262_v42 = vsel %vm156_vm5, %v261_v14, %v260_v52 }
  0xc8   :  { %v264_v50 = vsel %vm160_vm6, %v263_v51, %v262_v42 }
  0xc9   :  { %v277_v32 = vsel %vm156_vm5, %v276_v29, %v275_v48 }
  0xca   :  { %v279_v55 = vsel %vm160_vm6, %v278_v37, %v277_v32 }
  0xcc   :  { %v289_v36 = vld [vmem:[#allocation2] sm:$0x3]  ;;  %v235_v40 = vpop.xlane.xlu1 %234 }
  0xcd   :  { %v297_v45 = vmul.f32 %v296_v33, %v289_v36  ;;  %v280_v53 = vperm.slane %v235_v40, %v640_v57 }
  0xce   :  { %v211_v54 = vpop.xlane.xlu0 %210 }
  0xcf   :  { %v265_v56 = vperm.slane %v211_v54, %v640_v57  ;;  %423 = vmatmul.msk.f32.vlgmr.msra.gmra.mxu0 %vm308_vm10, %v297_v45  ;;  %v281_v58 = vsel %vm164_vm7, %v280_v53, %v279_v55  ;;  %v307_v57 = vld [vmem:[%s720_s2] sm:$0xf]  ;;  %s499_s2 = smov [#allocation7]  }
  0xd0   :  { %425 = vmatpush.msk.msra.mxu2 %vm362_vm11, %v307_v57  ;;  %s411_s8 = sshll.u32 %s499_s2, 4  ;;  %s412_s8 = int_to_ptr.vmem [resolvable:$true] %s411_s8 }
  0xd1   :  { %v266_v60 = vsel %vm164_vm7, %v265_v56, %v264_v50 }
  0xd2   :  { %v282_v61 = vsel %vm181_vm8, %v281_v58, %v266_v60 }
  0xd3   :  { %v284_v62 = vmax.f32 %v187_v59, %v282_v61 }
  0xd5   :  { %285 = vst.msk [vmem:[#allocation3] sm:$0x3] %vm35_vm0, %v284_v62 }
  0xdc   :  { %v298_v63 = vld [vmem:[#allocation3] sm:$0x3] }
  0xdd   :  { %424 = vmatmul.msk.f32.vlgmr.msra.gmra.mxu1 %vm308_vm10, %v298_v63 }
 0x14c   :  { %v329_v0 = vpop.f32.mrf.mxu0 }
 0x14d   :  { %v332_v2 = vmax.f32 %v329_v0, 0.0 }
 0x15a   :  { %v353_v1 = vpop.f32.mrf.mxu1 }
 0x15b   :  { %v356_v3 = vmax.f32 %v353_v1, 0.0 }
 0x15d   :  { %v357_v4 = vadd.f32 %v356_v3, %v332_v2 }
 0x15f   :  { %426 = vmatmul.msk.f32.vlgmr.msra.gmra.mxu2 %vm358_vm12, %v357_v4 }
 0x1e2   :  { %v383_v5 = vpop.f32.mrf.mxu2 }
 0x1e3   :  { %v427_v6 = vmul.f32 -1.442695, %v383_v5 }
 0x1e5   :  { %437 = vpow2.f32 %v427_v6 }
 0x1eb   :  { %v438_v8 = vpop.eup %437 }
 0x1ec   :  { %v389_v12 = vadd.f32 1.0, %v438_v8 }
 0x1ee   :  { %439 = vrcp.f32 %v389_v12  ;;  %v401_v17 = vand.u32 2147483648, %v389_v12  ;;  %v399_v19 = vand.u32 2147483647, %v389_v12  ;;  %vm395_vm14 = vweird.f32 %v389_v12 }
 0x1f0   :  { %v402_v21 = vor.u32 1.1754944e-38, %v401_v17  ;;  %vm400_vm1 = vcmp.eq.f32.partialorder %v399_v19, 8.507059e+37 }
 0x1f4   :  { %v440_v13 = vpop.eup %439 }
 0x1f5   :  { %v391_v15 = vmul.f32 %v440_v13, %v389_v12  ;;  %vm396_vm13 = vweird.f32 %v440_v13 }
 0x1f6   :  { %vm397_vm15 = vmor %vm395_vm14, %vm396_vm13 }
 0x1f7   :  { %v392_v16 = vsub.f32 1.0, %v391_v15 }
 0x1f9   :  { %v393_v18 = vmul.f32 %v440_v13, %v392_v16 }
 0x1fb   :  { %v394_v20 = vadd.f32 %v440_v13, %v393_v18 }
 0x1fd   :  { %v398_v23 = vsel %vm397_vm15, %v440_v13, %v394_v20 }
 0x1fe   :  { %v403_v24 = vsel %vm400_vm1, %v402_v21, %v398_v23 }
 0x1ff   :  { %405 = vst.msk [vmem:[#allocation7] sm:$0x3] %vm35_vm0, %v403_v24 }
 0x200   :  { %416 = dma.vmem_to_hbm [thread:$0]  %s412_s8, 32, %s414_s11, [#allocation6]  }
 0x201   :  { %491 = dma.done.wait [#allocation6], 32  }
 0x202   :  { %492 = vsyncadd [#allocation6], 4294967264 }
 0x203   :  { %421 = vsyncpa [#allocation5], 1 }
 0x204   :  { %422 = vsyncpa [#allocation6], 1 }

</bundles_post_ra>
